<compile_context>
chip_gen: v7x
topology: tpu7x:2x2x1
jax: 0.10.0
libtpu: 0.0.40
codegen_flags: <defaults>
</compile_context>

<pallas_src>
import jax
import jax.numpy as jnp
from jax.experimental import pallas as pl
from jax.experimental.pallas import tpu as pltpu
import numpy as np

SUBLANE_BF16 = 16          # bf16 sublane tile height
MAX_TILE_B = 4096          # max batch rows per grid step
MIN_BATCH_FOR_SPLIT = 512  # force >=2 grid steps above this (v7x megacore)


def _round_up(x, m):
    return (x + m - 1) // m * m


def _cdiv(a, b):
    return (a + b - 1) // b


def actor_kernel(x_ref, w1_ref, b1_ref, w2_ref, b2_ref, w3_ref, b3_ref, o_ref):
    # Fused 3-layer MLP on one (TILE_B, num_obs) batch tile.
    # Dot operands are bf16 (MXU-native); accumulation, bias, tanh in f32.
    x = x_ref[...].astype(jnp.bfloat16)                       # (TILE_B, num_obs)
    h1 = jnp.tanh(
        jnp.dot(x, w1_ref[...], preferred_element_type=jnp.float32) + b1_ref[...]
    )
    h2 = jnp.tanh(
        jnp.dot(h1.astype(jnp.bfloat16), w2_ref[...],
                preferred_element_type=jnp.float32) + b2_ref[...]
    )
    mu = jnp.dot(h2.astype(jnp.bfloat16), w3_ref[...],
                 preferred_element_type=jnp.float32) + b3_ref[...]
    o_ref[...] = mu                                            # (TILE_B, num_actions) f32


def prepare_actor_params(w1, b1, w2, b2, w3, b3):
    """Cast weights to bf16 / shape biases once, OUTSIDE the jitted forward."""
    return (
        jnp.asarray(w1, jnp.bfloat16),            # (num_obs, hidden)
        jnp.asarray(b1, jnp.float32).reshape(1, -1),
        jnp.asarray(w2, jnp.bfloat16),            # (hidden, hidden)
        jnp.asarray(b2, jnp.float32).reshape(1, -1),
        jnp.asarray(w3, jnp.bfloat16),            # (hidden, num_actions)
        jnp.asarray(b3, jnp.float32).reshape(1, -1),
    )


@jax.jit
def actor_forward(state, w1, b1, w2, b2, w3, b3):
    batch, num_obs = state.shape
    hidden = w1.shape[1]
    num_actions = w3.shape[1]

    # Balanced batch tiles: cap padding to <16 rows, keep tiles large, and give
    # v7x's second TensorCore at least one tile when the batch is big enough.
    n_tiles = _cdiv(batch, MAX_TILE_B)
    if batch >= MIN_BATCH_FOR_SPLIT:
        n_tiles = max(n_tiles, 2)
    tile_b = _round_up(_cdiv(batch, n_tiles), SUBLANE_BF16)
    batch_pad = _round_up(batch, tile_b)

    x = state.astype(jnp.float32)
    if batch_pad != batch:
        # Padded rows produce garbage (tanh(bias) chain) that is sliced off below.
        x = jnp.pad(x, ((0, batch_pad - batch), (0, 0)))

    grid = (batch_pad // tile_b,)
    resident = lambda i: (0, 0)  # weights/biases: same block every step (VMEM-resident)

    flops = 2 * batch_pad * (num_obs * hidden + hidden * hidden + hidden * num_actions)
    bytes_accessed = (
        batch_pad * num_obs * 4                                      # f32 state in
        + batch_pad * num_actions * 4                                # f32 mu out
        + (num_obs * hidden + hidden * hidden + hidden * num_actions) * 2  # bf16 weights
        + (2 * hidden + num_actions) * 4                             # f32 biases
    )

    out = pl.pallas_call(
        actor_kernel,
        out_shape=jax.ShapeDtypeStruct((batch_pad, num_actions), jnp.float32),
        grid=grid,
        in_specs=[
            pl.BlockSpec((tile_b, num_obs), lambda i: (i, 0)),   # state tile (full last dim)
            pl.BlockSpec((num_obs, hidden), resident),           # W1
            pl.BlockSpec((1, hidden), resident),                 # b1
            pl.BlockSpec((hidden, hidden), resident),            # W2
            pl.BlockSpec((1, hidden), resident),                 # b2
            pl.BlockSpec((hidden, num_actions), resident),       # W3
            pl.BlockSpec((1, num_actions), resident),            # b3
        ],
        out_specs=pl.BlockSpec((tile_b, num_actions), lambda i: (i, 0)),
        compiler_params=pltpu.CompilerParams(
            dimension_semantics=("parallel",),   # batch axis shards across TCs on v7x
        ),
        cost_estimate=pl.CostEstimate(
            flops=flops,
            transcendentals=2 * batch_pad * hidden,
            bytes_accessed=bytes_accessed,
        ),
    )(x, w1, b1, w2, b2, w3, b3)

    # TODO(synk): fuse the critic head into this pallas_call (concat W1 blocks to
    # widen the first matmul to N=128 and emit (mu, value)) so the state HBM read
    # and launch overhead are shared across both heads during rollout.
    if batch_pad != batch:
        out = out[:batch]
    return out


def orthogonal_linear_params(key, in_dim, out_dim, std):
    # Mimics Initialization.layer_init: orthogonal weight (gain=std), zero bias.
    # PyTorch weight is (out, in); we store the transpose (in, out) for x @ W.
    w_pt = jax.nn.initializers.orthogonal(scale=std)(key, (out_dim, in_dim), jnp.float32)
    w = jnp.transpose(w_pt)                    # (in, out)
    b = jnp.zeros((1, out_dim), jnp.float32)   # bias_const = 0.0
    return w, b


if __name__ == "__main__":
    # Small, Walker2d-flavored shapes.
    num_observations = 17
    num_actions = 6
    fc_dim_actor = 64
    batch = 8

    key = jax.random.PRNGKey(0)
    k_x, k_w1, k_w2, k_w3 = jax.random.split(key, 4)

    state = jax.random.normal(k_x, (batch, num_observations), jnp.float32)

    w1, b1 = orthogonal_linear_params(k_w1, num_observations, fc_dim_actor, np.sqrt(2))
    w2, b2 = orthogonal_linear_params(k_w2, fc_dim_actor, fc_dim_actor, np.sqrt(2))
    w3, b3 = orthogonal_linear_params(k_w3, fc_dim_actor, num_actions, 0.01)
    # policy_logstd = zeros(1, num_actions) exists on the module but is not
    # used in forward(), so it is not part of the kernel.

    params = prepare_actor_params(w1, b1, w2, b2, w3, b3)  # one-time bf16 cast

    mu = actor_forward(state, *params)
    mu = jax.block_until_ready(mu)

    # Reference 1: identical bf16-operand / f32-accumulate math (apples-to-apples).
    def ref_bf16(x):
        h1 = jnp.tanh(jnp.dot(x.astype(jnp.bfloat16), w1.astype(jnp.bfloat16),
                              preferred_element_type=jnp.float32) + b1)
        h2 = jnp.tanh(jnp.dot(h1.astype(jnp.bfloat16), w2.astype(jnp.bfloat16),
                              preferred_element_type=jnp.float32) + b2)
        return jnp.dot(h2.astype(jnp.bfloat16), w3.astype(jnp.bfloat16),
                       preferred_element_type=jnp.float32) + b3

    ref = ref_bf16(state)
    np.testing.assert_allclose(np.asarray(mu), np.asarray(ref), rtol=1e-3, atol=1e-3)

    # Reference 2: full-f32 reference, loose tolerance (bf16 operand rounding).
    ref32 = jnp.tanh(state @ w1 + b1)
    ref32 = jnp.tanh(ref32 @ w2 + b2)
    ref32 = ref32 @ w3 + b3
    np.testing.assert_allclose(np.asarray(mu), np.asarray(ref32), rtol=5e-2, atol=5e-2)

    assert mu.shape == (batch, num_actions)
    print("KERNEL_OK")
</pallas_src>

<mosaic_0001>
module attributes {stable_mosaic.version = 11 : i64} {
  func.func @actor_kernel(%arg0: i32, %arg1: memref<16x17xf32, #tpu.memory_space<vmem>>, %arg2: memref<17x64xbf16, #tpu.memory_space<vmem>>, %arg3: memref<1x64xf32, #tpu.memory_space<vmem>>, %arg4: memref<64x64xbf16, #tpu.memory_space<vmem>>, %arg5: memref<1x64xf32, #tpu.memory_space<vmem>>, %arg6: memref<64x6xbf16, #tpu.memory_space<vmem>>, %arg7: memref<1x6xf32, #tpu.memory_space<vmem>>, %arg8: memref<16x6xf32, #tpu.memory_space<vmem>>) attributes {dimension_semantics = [#tpu.dimension_semantics<parallel>], iteration_bounds = array<i64: 1>, scalar_prefetch = 0 : i64, scratch_operands = 0 : i64, tpu.core_type = #tpu.core_type<tc>, window_params = [{transform_indices = @transform_0, window_bounds = array<i64: 16, 17>}, {pipeline_mode = #tpu.pipeline_mode<synchronous>, transform_indices = @transform_1, window_bounds = array<i64: 17, 64>}, {pipeline_mode = #tpu.pipeline_mode<synchronous>, transform_indices = @transform_2, window_bounds = array<i64: 1, 64>}, {pipeline_mode = #tpu.pipeline_mode<synchronous>, transform_indices = @transform_3, window_bounds = array<i64: 64, 64>}, {pipeline_mode = #tpu.pipeline_mode<synchronous>, transform_indices = @transform_4, window_bounds = array<i64: 1, 64>}, {pipeline_mode = #tpu.pipeline_mode<synchronous>, transform_indices = @transform_5, window_bounds = array<i64: 64, 6>}, {pipeline_mode = #tpu.pipeline_mode<synchronous>, transform_indices = @transform_6, window_bounds = array<i64: 1, 6>}, {transform_indices = @transform_7, window_bounds = array<i64: 16, 6>}]} {
    %c0 = arith.constant 0 : index
    %c0_0 = arith.constant 0 : index
    %0 = vector.load %arg1[%c0, %c0_0] : memref<16x17xf32, #tpu.memory_space<vmem>>, vector<16x17xf32>
    %1 = arith.truncf %0 : vector<16x17xf32> to vector<16x17xbf16>
    %c0_1 = arith.constant 0 : index
    %c0_2 = arith.constant 0 : index
    %2 = vector.load %arg2[%c0_1, %c0_2] : memref<17x64xbf16, #tpu.memory_space<vmem>>, vector<17x64xbf16>
    %cst = arith.constant dense<0.000000e+00> : vector<16x64xf32>
    %3 = tpu.matmul %1, %2, %cst {dimension_numbers = #tpu.dot_dimension_numbers<[1], [0], [0], [1], [0, 0, 1, 1], [], []>} : vector<16x17xbf16>, vector<17x64xbf16>, vector<16x64xf32> -> vector<16x64xf32>
    %c0_3 = arith.constant 0 : index
    %c0_4 = arith.constant 0 : index
    %4 = vector.load %arg3[%c0_3, %c0_4] : memref<1x64xf32, #tpu.memory_space<vmem>>, vector<1x64xf32>
    %5 = vector.broadcast %4 : vector<1x64xf32> to vector<16x64xf32>
    %6 = arith.addf %3, %5 : vector<16x64xf32>
    %7 = math.tanh %6 : vector<16x64xf32>
    %8 = arith.truncf %7 : vector<16x64xf32> to vector<16x64xbf16>
    %c0_5 = arith.constant 0 : index
    %c0_6 = arith.constant 0 : index
    %9 = vector.load %arg4[%c0_5, %c0_6] : memref<64x64xbf16, #tpu.memory_space<vmem>>, vector<64x64xbf16>
    %cst_7 = arith.constant dense<0.000000e+00> : vector<16x64xf32>
    %10 = tpu.matmul %8, %9, %cst_7 {dimension_numbers = #tpu.dot_dimension_numbers<[1], [0], [0], [1], [0, 0, 1, 1], [], []>} : vector<16x64xbf16>, vector<64x64xbf16>, vector<16x64xf32> -> vector<16x64xf32>
    %c0_8 = arith.constant 0 : index
    %c0_9 = arith.constant 0 : index
    %11 = vector.load %arg5[%c0_8, %c0_9] : memref<1x64xf32, #tpu.memory_space<vmem>>, vector<1x64xf32>
    %12 = vector.broadcast %11 : vector<1x64xf32> to vector<16x64xf32>
    %13 = arith.addf %10, %12 : vector<16x64xf32>
    %14 = math.tanh %13 : vector<16x64xf32>
    %15 = arith.truncf %14 : vector<16x64xf32> to vector<16x64xbf16>
    %c0_10 = arith.constant 0 : index
    %c0_11 = arith.constant 0 : index
    %16 = vector.load %arg6[%c0_10, %c0_11] : memref<64x6xbf16, #tpu.memory_space<vmem>>, vector<64x6xbf16>
    %cst_12 = arith.constant dense<0.000000e+00> : vector<16x6xf32>
    %17 = tpu.matmul %15, %16, %cst_12 {dimension_numbers = #tpu.dot_dimension_numbers<[1], [0], [0], [1], [0, 0, 1, 1], [], []>} : vector<16x64xbf16>, vector<64x6xbf16>, vector<16x6xf32> -> vector<16x6xf32>
    %c0_13 = arith.constant 0 : index
    %c0_14 = arith.constant 0 : index
    %18 = vector.load %arg7[%c0_13, %c0_14] : memref<1x6xf32, #tpu.memory_space<vmem>>, vector<1x6xf32>
    %19 = vector.broadcast %18 : vector<1x6xf32> to vector<16x6xf32>
    %20 = arith.addf %17, %19 : vector<16x6xf32>
    %c0_15 = arith.constant 0 : index
    %c0_16 = arith.constant 0 : index
    %21 = vector.load %arg8[%c0_15, %c0_16] : memref<16x6xf32, #tpu.memory_space<vmem>>, vector<16x6xf32>
    tpu.vector_store %arg8[%c0_15, %c0_16], %20 {strides = array<i32>} : memref<16x6xf32, #tpu.memory_space<vmem>>, vector<16x6xf32>,
    return
  }
  func.func @transform_0(%arg0: i32) -> (i32, i32) {
    %c0_i32 = arith.constant 0 : i32
    %c0_i32_0 = arith.constant 0 : i32
    return %arg0, %c0_i32 : i32, i32
  }
  func.func @transform_1(%arg0: i32) -> (i32, i32) {
    %c0_i32 = arith.constant 0 : i32
    %c0_i32_0 = arith.constant 0 : i32
    %c0_i32_1 = arith.constant 0 : i32
    return %c0_i32, %c0_i32_0 : i32, i32
  }
  func.func @transform_2(%arg0: i32) -> (i32, i32) {
    %c0_i32 = arith.constant 0 : i32
    %c0_i32_0 = arith.constant 0 : i32
    %c0_i32_1 = arith.constant 0 : i32
    return %c0_i32, %c0_i32_0 : i32, i32
  }
  func.func @transform_3(%arg0: i32) -> (i32, i32) {
    %c0_i32 = arith.constant 0 : i32
    %c0_i32_0 = arith.constant 0 : i32
    %c0_i32_1 = arith.constant 0 : i32
    return %c0_i32, %c0_i32_0 : i32, i32
  }
  func.func @transform_4(%arg0: i32) -> (i32, i32) {
    %c0_i32 = arith.constant 0 : i32
    %c0_i32_0 = arith.constant 0 : i32
    %c0_i32_1 = arith.constant 0 : i32
    return %c0_i32, %c0_i32_0 : i32, i32
  }
  func.func @transform_5(%arg0: i32) -> (i32, i32) {
    %c0_i32 = arith.constant 0 : i32
    %c0_i32_0 = arith.constant 0 : i32
    %c0_i32_1 = arith.constant 0 : i32
    return %c0_i32, %c0_i32_0 : i32, i32
  }
  func.func @transform_6(%arg0: i32) -> (i32, i32) {
    %c0_i32 = arith.constant 0 : i32
    %c0_i32_0 = arith.constant 0 : i32
    %c0_i32_1 = arith.constant 0 : i32
    return %c0_i32, %c0_i32_0 : i32, i32
  }
  func.func @transform_7(%arg0: i32) -> (i32, i32) {
    %c0_i32 = arith.constant 0 : i32
    %c0_i32_0 = arith.constant 0 : i32
    return %arg0, %c0_i32 : i32, i32
  }
}

</mosaic_0001>

<bundles_post_ra>
// kernel: actor_forward.1
= control target key start
LH: loop header
LB: loop body
LE: loop exit
PB: predicated region body
PF: predicated region fallthrough
CT: control target
= control target key end

     0   :  { %vm53_vm0 = vcmask 1040384   ;;  %v362_v0 = vmov 0.0   ;;  %v363_v2 = vmov 0   ;;  %vm364_vm1 = vmmov 0   ;;  %s458_s1 = inlined_call_operand.vmem [shape: bf16[17,64], index: 1, kind: input, shape index: {}]   ;;  %s459_s0 = inlined_call_operand.vmem [shape: f32[16,17], index: 0, kind: input, shape index: {}]   ;;  %s460_s3 = inlined_call_operand.vmem [shape: bf16[64,64], index: 3, kind: input, shape index: {}]   ;;  %s461_s2 = inlined_call_operand.vmem [shape: f32[1,64], index: 2, kind: input, shape index: {}]   ;;  %s462_s5 = inlined_call_operand.vmem [shape: bf16[64,6], index: 5, kind: input, shape index: {}]   ;;  %s463_s4 = inlined_call_operand.vmem [shape: f32[1,64], index: 4, kind: input, shape index: {}]   ;;  %s464_s6 = inlined_call_operand.vmem [shape: f32[1,6], index: 6, kind: input, shape index: {}]   ;;  %s465_s7 = inlined_call_operand.vmem [shape: f32[16,6], index: 7, kind: output, shape index: {}]  }
   0x1   :  { %309 = vmatprep.subr.bf16.mxu0 %v362_v0  ;;  %v344_v1 = vld [vmem:[%s458_s1] sm:$0xff]   ;;  %v55_v3 = vsel %vm53_vm0, 65535, %v363_v2  ;;  %313 = vmatprep.mubr.msk.bf16.mxu0 %vm364_vm1, %v362_v0  ;;  %v345_v4 = vld [vmem:[%s458_s1 + $0x8] ss:$0 sps:$4 sm:$0x11]   ;;  %vm49_vm2 = vcmask 138240  }
   0x2   :  { %317 = vmatprep.subr.bf16.mxu1 %v362_v0  ;;  %325 = vmatprep.mubr.msk.bf16.mxu1 %vm364_vm1, %v362_v0  ;;  %v27_v5 = vld [vmem:[%s459_s0] sm:$0xff]  ;;  %v28_v6 = vld [vmem:[%s459_s0 + $0x8] sm:$0xff]  ;;  %v57_v7 = vand.u32 %v345_v4, %v55_v3  ;;  %v348_v11 = vld [vmem:[%s460_s3 + $0x10] sm:$0xff]   ;;  %vm142_vm3 = vcmask 523264   ;;  %vm273_vm4 = vcmask 48128  }
   0x3   :  { %310 = vmatpush3.bf16.msra.mxu0 %v344_v1  ;;  %v29_v8 = vpack.c.bf16 %v28_v6, %v27_v5  ;;  %v346_v9 = vld [vmem:[%s460_s3] sm:$0xff]   ;;  %v347_v10 = vld [vmem:[%s460_s3 + $0x8] sm:$0xff]   ;;  %v349_v12 = vld [vmem:[%s460_s3 + $0x18] sm:$0xff]  }
   0x4   :  { %311 = vmatprep.subr.bf16.mxu0 %v362_v0  ;;  %318 = vmatpush3.bf16.msra.mxu1 %v346_v9  ;;  %v280_v13 = vld [vmem:[%s461_s2] ss:$0 sm:$0xff]  ;;  %v351_v24 = vld [vmem:[%s462_s5 + $0x8] sm:$0xff]   ;;  %v352_v25 = vld [vmem:[%s462_s5 + $0x10] sm:$0xff]  }
   0x5   :  { %319 = vmatprep.subr.bf16.mxu1 %v362_v0  ;;  %v350_v23 = vld [vmem:[%s462_s5] sm:$0xff]   ;;  %v353_v26 = vld [vmem:[%s462_s5 + $0x18] sm:$0xff]  }
   0x6   :  { %v284_v27 = vld [vmem:[%s463_s4] ss:$0 sm:$0xff] }
   0x7   :  { %312 = vmatpush3.bf16.msra.mxu0 %v57_v7  ;;  %v290_v37 = vld [vmem:[%s464_s6] ss:$0 sm:$0xff] }
   0x8   :  { %329 = vmatprep.subr.bf16.mxu0 %v362_v0  ;;  %320 = vmatpush3.bf16.msra.mxu1 %v347_v10 }
   0x9   :  { %321 = vmatprep.subr.bf16.mxu1 %v362_v0 }
   0xa   :  { %314 = vmatmul.mubr.msk.bf16.vlgmr.msra.gmra.mrb[0].mxu0 %vm49_vm2, %v29_v8 }
   0xb   :  { %337 = vmatprep.mubr.msk.bf16.mxu0 %vm364_vm1, %v362_v0  ;;  %330 = vmatpush3.bf16.msra.mxu0 %v350_v23 }
   0xc   :  { %322 = vmatpush3.bf16.msra.mxu1 %v348_v11  ;;  %331 = vmatprep.subr.bf16.mxu0 %v362_v0 }
   0xd   :  { %323 = vmatprep.subr.bf16.mxu1 %v362_v0 }
   0xf   :  { %332 = vmatpush3.bf16.msra.mxu0 %v351_v24 }
  0x10   :  { %324 = vmatpush3.bf16.msra.mxu1 %v349_v12  ;;  %333 = vmatprep.subr.bf16.mxu0 %v362_v0 }
  0x13   :  { %334 = vmatpush3.bf16.msra.mxu0 %v352_v25 }
  0x14   :  { %335 = vmatprep.subr.bf16.mxu0 %v362_v0 }
  0x17   :  { %336 = vmatpush3.bf16.msra.mxu0 %v353_v26 }
  0xdd   :  { %v93_v14 = vpop.f32.mrb[0].mxu0 }
  0xde   :  { %v94_v15 = vadd.f32 %v280_v13, %v93_v14  ;;  %v315_v16 = vpop.f32.mrb[1].mxu0 }
  0xdf   :  { %v96_v17 = vpop.f32.mrb[2].mxu0 }
  0xe0   :  { %v97_v18 = vadd.f32 %v280_v13, %v96_v17  ;;  %v316_v19 = vpop.f32.mrb[3].mxu0  ;;  %354 = vtanh.f32 %v94_v15 }
  0xe2   :  { %356 = vtanh.f32 %v97_v18 }
  0xea   :  { %v355_v20 = vpop.eup %354 }
  0xec   :  { %v357_v21 = vpop.eup %356 }
  0xed   :  { %v102_v22 = vpack.c.bf16 %v357_v21, %v355_v20 }
  0xef   :  { %326 = vmatmul.mubr.msk.bf16.vlgmr.msra.gmra.mrb[0].mxu1 %vm142_vm3, %v102_v22 }
 0x1c2   :  { %v180_v28 = vpop.f32.mrb[0].mxu1 }
 0x1c3   :  { %v181_v29 = vadd.f32 %v284_v27, %v180_v28  ;;  %v327_v30 = vpop.f32.mrb[1].mxu1 }
 0x1c4   :  { %v183_v31 = vpop.f32.mrb[2].mxu1 }
 0x1c5   :  { %v184_v32 = vadd.f32 %v284_v27, %v183_v31  ;;  %v328_v33 = vpop.f32.mrb[3].mxu1  ;;  %358 = vtanh.f32 %v181_v29 }
 0x1c7   :  { %360 = vtanh.f32 %v184_v32 }
 0x1cf   :  { %v359_v34 = vpop.eup %358 }
 0x1d1   :  { %v361_v35 = vpop.eup %360 }
 0x1d2   :  { %v189_v36 = vpack.c.bf16 %v361_v35, %v359_v34 }
 0x1d4   :  { %338 = vmatmul.mubr.msk.bf16.vlgmr.msra.gmra.mrb[4].mxu0 %vm142_vm3, %v189_v36 }
 0x2a7   :  { %v266_v38 = vpop.f32.mrb[4].mxu0 }
 0x2a8   :  { %v267_v39 = vadd.f32 %v290_v37, %v266_v38  ;;  %v339_v40 = vpop.f32.mrb[5].mxu0 }
 0x2a9   :  { %v269_v41 = vpop.f32.mrb[6].mxu0 }
 0x2aa   :  { %274 = vst.msk [vmem:[%s465_s7] sm:$0xff] %vm273_vm4, %v267_v39  ;;  %v270_v42 = vadd.f32 %v290_v37, %v269_v41  ;;  %v340_v43 = vpop.f32.mrb[7].mxu0 }
 0x2ac   :  { %275 = vst.msk [vmem:[%s465_s7 + $0x8] sm:$0xff] %vm273_vm4, %v270_v42 }

</bundles_post_ra>
